<compile_context>
chip_gen: v7x
topology: tpu7x:2x2x1
jax: 0.10.0
libtpu: 0.0.40
codegen_flags: <defaults>
</compile_context>

<pallas_src>
import functools

import jax
import jax.numpy as jnp
from jax.experimental import pallas as pl
from jax.experimental.pallas import tpu as pltpu


def _round_up(x, m):
    return (x + m - 1) // m * m


# ---------------------------------------------------------------------------
# Kernel: one (part, class-tile) grid step.
#   x_ref     : (1, n, c)         activations for this part
#   gb_ref    : (1, 2, c)         row 0 = gamma, row 1 = beta
#   w_ref     : (1, c, cls_tile)  fc_bin slice (compute dtype, e.g. bf16)
#   feat_ref  : (1, n, c)         BN'd + L2-normalized feature (written at j==0)
#   logit_ref : (1, n, cls_tile)
#   fscr_ref  : (n, c)            feature in matmul dtype, reused across class tiles
# ---------------------------------------------------------------------------
def _bnneck_kernel(x_ref, gb_ref, w_ref, feat_ref, logit_ref, fscr_ref, *, eps, norm):
    j = pl.program_id(1)

    @pl.when(j == 0)
    def _():
        x = x_ref[0]                            # (n, c) f32
        gb = gb_ref[0]                          # (2, c)
        g = gb[0:1, :]
        b = gb[1:2, :]

        # BatchNorm1d (training-mode batch stats, biased var), folded into one
        # fused scale/shift.
        mean = jnp.mean(x, axis=0, keepdims=True)
        var = jnp.mean(jnp.square(x - mean), axis=0, keepdims=True)
        scale = g * jax.lax.rsqrt(var + eps)
        shift = b - mean * scale
        y = x * scale + shift                   # (n, c)

        if norm:
            # F.normalize(y, dim=-1) == y / max(||y||, 1e-12), via EUP rsqrt.
            inv = jax.lax.rsqrt(
                jnp.maximum(jnp.sum(y * y, axis=-1, keepdims=True), 1e-24))
            feature = y * inv
        else:
            feature = y

        feat_ref[0] = feature.astype(feat_ref.dtype)
        fscr_ref[...] = feature.astype(fscr_ref.dtype)

    w = w_ref[0]                                # (c, cls_tile)
    if norm:
        # F.normalize(fc_bin, dim=1): unit class columns (rsqrt on EUP).
        # TODO(synk): for frozen fc_bin (inference) pre-normalize the weights
        # once outside the kernel and skip this reduction entirely.
        wf = w.astype(jnp.float32)
        winv = jax.lax.rsqrt(
            jnp.maximum(jnp.sum(wf * wf, axis=0, keepdims=True), 1e-24))
        w = (wf * winv).astype(w_ref.dtype)

    logit_ref[0] = jnp.dot(
        fscr_ref[...], w, preferred_element_type=jnp.float32
    ).astype(logit_ref.dtype)


@functools.partial(jax.jit, static_argnames=("norm", "eps", "cls_tile", "compute_dtype"))
def separate_bn_necks(x, fc_bin, gamma, beta, *, norm=True, eps=1e-5,
                      cls_tile=512, compute_dtype=jnp.bfloat16):
    """SeparateBNNecks forward.

    x      : (p, n, c)  f32
    fc_bin : (p, c, class_num)
    gamma  : (p, c)   == bn1d.weight.view(p, c)  (p-major, matching torch)
    beta   : (p, c)   == bn1d.bias.view(p, c)
    returns (feature (p, n, c), logits (p, n, class_num))
    """
    p, n, c = x.shape
    p_w, c_w, cls = fc_bin.shape
    assert (p_w, c_w) == (p, c)
    assert gamma.shape == (p, c) and beta.shape == (p, c)

    # Class-tile: multiple of 128 (lane / MXU width on every generation),
    # capped at `cls_tile` to keep the double-buffered weight + logits tiles
    # well inside v5e's 16 MiB scoped default and v7x's 64 MiB VMEM.
    tile = _round_up(min(cls_tile, _round_up(cls, 128)), 128)
    cls_pad = _round_up(cls, tile)
    num_cls_tiles = cls_pad // tile

    # Only the class dim is padded (all-zero columns -> zero logits, sliced
    # off below). Channel dim uses full-extent blocks, so there is no x /
    # gamma / beta padding and no feature post-slice copy.
    w = fc_bin
    if cls_pad != cls:
        w = jnp.pad(w, ((0, 0), (0, 0), (0, cls_pad - cls)))
    # TODO(synk): for frozen weights, pad/cast fc_bin once at parameter-init
    # time instead of inside the jitted hot path.
    w = w.astype(compute_dtype)

    gb = jnp.stack([gamma, beta], axis=1)        # (p, 2, c): one DMA per part

    kernel = functools.partial(_bnneck_kernel, eps=eps, norm=norm)

    feat, logits = pl.pallas_call(
        kernel,
        out_shape=(
            jax.ShapeDtypeStruct((p, n, c), x.dtype),
            jax.ShapeDtypeStruct((p, n, cls_pad), jnp.float32),
        ),
        grid_spec=pltpu.PrefetchScalarGridSpec(
            num_scalar_prefetch=0,
            grid=(p, num_cls_tiles),
            in_specs=[
                pl.BlockSpec((1, n, c), lambda i, j: (i, 0, 0)),
                pl.BlockSpec((1, 2, c), lambda i, j: (i, 0, 0)),
                pl.BlockSpec((1, c, tile), lambda i, j: (i, 0, j)),
            ],
            out_specs=[
                pl.BlockSpec((1, n, c), lambda i, j: (i, 0, 0)),
                pl.BlockSpec((1, n, tile), lambda i, j: (i, 0, j)),
            ],
            scratch_shapes=[pltpu.VMEM((n, c), compute_dtype)],
        ),
        compiler_params=pltpu.CompilerParams(
            dimension_semantics=("parallel", "arbitrary"),
            vmem_limit_bytes=32 * 1024 * 1024,
        ),
    )(x, gb, w)

    if cls_pad != cls:
        logits = logits[..., :cls]
    return feat, logits


# ---------------------------------------------------------------------------
# Pure-JAX reference (mirrors the torch forward, training-mode BN, f32).
# ---------------------------------------------------------------------------
def _ref_forward(x, fc_bin, gamma, beta, *, norm=True, eps=1e-5):
    mean = jnp.mean(x, axis=1, keepdims=True)
    var = jnp.mean(jnp.square(x - mean), axis=1, keepdims=True)
    y = (x - mean) / jnp.sqrt(var + eps) * gamma[:, None, :] + beta[:, None, :]
    if norm:
        f = y / jnp.maximum(jnp.linalg.norm(y, axis=-1, keepdims=True), 1e-12)
        w = fc_bin / jnp.maximum(
            jnp.linalg.norm(fc_bin, axis=1, keepdims=True), 1e-12)
        logits = jnp.einsum("pnc,pck->pnk", f, w)
    else:
        f = y
        logits = jnp.einsum("pnc,pck->pnk", f, fc_bin)
    return f, logits


if __name__ == "__main__":
    # SeparateBNNecks(parts_num=4, in_channels=32, class_num=64)
    P, N, C, CLS = 4, 8, 32, 64

    key = jax.random.PRNGKey(0)
    kx, kw, kg, kb = jax.random.split(key, 4)
    x = jax.random.normal(kx, (P, N, C), dtype=jnp.float32)
    # xavier_uniform-like fc_bin parameter.
    limit = (6.0 / (C + CLS)) ** 0.5
    fc_bin = jax.random.uniform(
        kw, (P, C, CLS), dtype=jnp.float32, minval=-limit, maxval=limit)
    # BN affine params (torch defaults are ones/zeros; perturb to exercise math).
    gamma = 1.0 + 0.1 * jax.random.normal(kg, (P, C), dtype=jnp.float32)
    beta = 0.1 * jax.random.normal(kb, (P, C), dtype=jnp.float32)

    feature, logits = separate_bn_necks(x, fc_bin, gamma, beta)
    feature, logits = jax.block_until_ready((feature, logits))

    f_ref, l_ref = _ref_forward(x, fc_bin, gamma, beta)
    assert feature.shape == (P, N, C) and logits.shape == (P, N, CLS)
    # Feature path is pure f32 inside the kernel.
    assert jnp.allclose(feature, f_ref, atol=1e-5, rtol=1e-5)
    # Logits use bf16 feature/weight streaming with f32 accumulation; values
    # are cosine similarities in [-1, 1], abs error ~1e-2.
    assert jnp.allclose(logits, l_ref, atol=2e-2, rtol=2e-2)

    print("KERNEL_OK")
</pallas_src>

<mosaic_0001>
module attributes {stable_mosaic.version = 11 : i64} {
  func.func @_bnneck_kernel(%arg0: i32, %arg1: i32, %arg2: memref<1x8x32xf32, #tpu.memory_space<vmem>>, %arg3: memref<1x2x32xf32, #tpu.memory_space<vmem>>, %arg4: memref<1x32x128xbf16, #tpu.memory_space<vmem>>, %arg5: memref<1x8x32xf32, #tpu.memory_space<vmem>>, %arg6: memref<1x8x128xf32, #tpu.memory_space<vmem>>, %arg7: memref<8x32xbf16, #tpu.memory_space<vmem>>) attributes {dimension_semantics = [#tpu.dimension_semantics<parallel>, #tpu.dimension_semantics<arbitrary>], iteration_bounds = array<i64: 4, 1>, scalar_prefetch = 0 : i64, scratch_operands = 1 : i64, tpu.core_type = #tpu.core_type<tc>, window_params = [{transform_indices = @transform_0, window_bounds = array<i64: 1, 8, 32>}, {transform_indices = @transform_1, window_bounds = array<i64: 1, 2, 32>}, {transform_indices = @transform_2, window_bounds = array<i64: 1, 32, 128>}, {transform_indices = @transform_3, window_bounds = array<i64: 1, 8, 32>}, {transform_indices = @transform_4, window_bounds = array<i64: 1, 8, 128>}]} {
    %c0_i32 = arith.constant 0 : i32
    %0 = arith.cmpi eq, %arg1, %c0_i32 : i32
    %1 = arith.extui %0 : i1 to i32
    %c0_i32_0 = arith.constant 0 : i32
    %2 = arith.cmpi ne, %1, %c0_i32_0 : i32
    scf.if %2 {
      %c0_10 = arith.constant 0 : index
      %c0_11 = arith.constant 0 : index
      %c0_12 = arith.constant 0 : index
      %20 = vector.load %arg2[%c0_10, %c0_11, %c0_12] : memref<1x8x32xf32, #tpu.memory_space<vmem>>, vector<1x8x32xf32>
      %21 = vector.shape_cast %20 : vector<1x8x32xf32> to vector<8x32xf32>
      %c0_13 = arith.constant 0 : index
      %c0_14 = arith.constant 0 : index
      %c0_15 = arith.constant 0 : index
      %22 = vector.load %arg3[%c0_13, %c0_14, %c0_15] : memref<1x2x32xf32, #tpu.memory_space<vmem>>, vector<1x2x32xf32>
      %23 = vector.shape_cast %22 : vector<1x2x32xf32> to vector<2x32xf32>
      %24 = vector.extract_strided_slice %23 {offsets = [0, 0], sizes = [1, 32], strides = [1, 1]} : vector<2x32xf32> to vector<1x32xf32>
      %25 = vector.extract_strided_slice %23 {offsets = [1, 0], sizes = [1, 32], strides = [1, 1]} : vector<2x32xf32> to vector<1x32xf32>
      %cst_16 = arith.constant dense<0.000000e+00> : vector<32xf32>
      %26 = vector.multi_reduction <add>, %21, %cst_16 [0] : vector<8x32xf32> to vector<32xf32>
      %27 = vector.shape_cast %26 : vector<32xf32> to vector<1x32xf32>
      %cst_17 = arith.constant 8.000000e+00 : f32
      %28 = vector.broadcast %cst_17 : f32 to vector<1x32xf32>
      %29 = arith.divf %27, %28 : vector<1x32xf32>
      %30 = vector.broadcast %29 : vector<1x32xf32> to vector<8x32xf32>
      %31 = arith.subf %21, %30 : vector<8x32xf32>
      %32 = arith.mulf %31, %31 : vector<8x32xf32>
      %cst_18 = arith.constant dense<0.000000e+00> : vector<32xf32>
      %33 = vector.multi_reduction <add>, %32, %cst_18 [0] : vector<8x32xf32> to vector<32xf32>
      %34 = vector.shape_cast %33 : vector<32xf32> to vector<1x32xf32>
      %cst_19 = arith.constant 8.000000e+00 : f32
      %35 = vector.broadcast %cst_19 : f32 to vector<1x32xf32>
      %36 = arith.divf %34, %35 : vector<1x32xf32>
      %cst_20 = arith.constant 9.99999974E-6 : f32
      %37 = vector.broadcast %cst_20 : f32 to vector<1x32xf32>
      %38 = arith.addf %36, %37 : vector<1x32xf32>
      %39 = math.rsqrt %38 : vector<1x32xf32>
      %40 = arith.mulf %24, %39 : vector<1x32xf32>
      %41 = arith.mulf %29, %40 : vector<1x32xf32>
      %42 = arith.subf %25, %41 : vector<1x32xf32>
      %43 = vector.broadcast %40 : vector<1x32xf32> to vector<8x32xf32>
      %44 = arith.mulf %21, %43 : vector<8x32xf32>
      %45 = vector.broadcast %42 : vector<1x32xf32> to vector<8x32xf32>
      %46 = arith.addf %44, %45 : vector<8x32xf32>
      %47 = arith.mulf %46, %46 : vector<8x32xf32>
      %cst_21 = arith.constant dense<0.000000e+00> : vector<8xf32>
      %48 = vector.multi_reduction <add>, %47, %cst_21 [1] : vector<8x32xf32> to vector<8xf32>
      %49 = vector.shape_cast %48 : vector<8xf32> to vector<8x1xf32>
      %cst_22 = arith.constant 1.000000e-24 : f32
      %50 = vector.broadcast %cst_22 : f32 to vector<8x1xf32>
      %51 = arith.maximumf %49, %50 : vector<8x1xf32>
      %52 = math.rsqrt %51 : vector<8x1xf32>
      %53 = vector.broadcast %52 : vector<8x1xf32> to vector<8x32xf32>
      %54 = arith.mulf %46, %53 : vector<8x32xf32>
      %c0_23 = arith.constant 0 : index
      %c0_24 = arith.constant 0 : index
      %c0_25 = arith.constant 0 : index
      %55 = vector.load %arg5[%c0_23, %c0_24, %c0_25] : memref<1x8x32xf32, #tpu.memory_space<vmem>>, vector<1x8x32xf32>
      %56 = vector.shape_cast %55 : vector<1x8x32xf32> to vector<8x32xf32>
      %57 = vector.shape_cast %54 : vector<8x32xf32> to vector<1x8x32xf32>
      tpu.vector_store %arg5[%c0_23, %c0_24, %c0_25], %57 {strides = array<i32>} : memref<1x8x32xf32, #tpu.memory_space<vmem>>, vector<1x8x32xf32>,
      %58 = arith.truncf %54 : vector<8x32xf32> to vector<8x32xbf16>
      %c0_26 = arith.constant 0 : index
      %c0_27 = arith.constant 0 : index
      %59 = vector.load %arg7[%c0_26, %c0_27] : memref<8x32xbf16, #tpu.memory_space<vmem>>, vector<8x32xbf16>
      tpu.vector_store %arg7[%c0_26, %c0_27], %58 {strides = array<i32>} : memref<8x32xbf16, #tpu.memory_space<vmem>>, vector<8x32xbf16>,
    } else {
    }
    %c0 = arith.constant 0 : index
    %c0_1 = arith.constant 0 : index
    %c0_2 = arith.constant 0 : index
    %3 = vector.load %arg4[%c0, %c0_1, %c0_2] : memref<1x32x128xbf16, #tpu.memory_space<vmem>>, vector<1x32x128xbf16>
    %4 = vector.shape_cast %3 : vector<1x32x128xbf16> to vector<32x128xbf16>
    %5 = arith.extf %4 : vector<32x128xbf16> to vector<32x128xf32>
    %6 = arith.mulf %5, %5 : vector<32x128xf32>
    %cst = arith.constant dense<0.000000e+00> : vector<128xf32>
    %7 = vector.multi_reduction <add>, %6, %cst [0] : vector<32x128xf32> to vector<128xf32>
    %8 = vector.shape_cast %7 : vector<128xf32> to vector<1x128xf32>
    %cst_3 = arith.constant 1.000000e-24 : f32
    %9 = vector.broadcast %cst_3 : f32 to vector<1x128xf32>
    %10 = arith.maximumf %8, %9 : vector<1x128xf32>
    %11 = math.rsqrt %10 : vector<1x128xf32>
    %12 = vector.broadcast %11 : vector<1x128xf32> to vector<32x128xf32>
    %13 = arith.mulf %5, %12 : vector<32x128xf32>
    %14 = arith.truncf %13 : vector<32x128xf32> to vector<32x128xbf16>
    %c0_4 = arith.constant 0 : index
    %c0_5 = arith.constant 0 : index
    %15 = vector.load %arg7[%c0_4, %c0_5] : memref<8x32xbf16, #tpu.memory_space<vmem>>, vector<8x32xbf16>
    %cst_6 = arith.constant dense<0.000000e+00> : vector<8x128xf32>
    %16 = tpu.matmul %15, %14, %cst_6 {dimension_numbers = #tpu.dot_dimension_numbers<[1], [0], [0], [1], [0, 0, 1, 1], [], []>} : vector<8x32xbf16>, vector<32x128xbf16>, vector<8x128xf32> -> vector<8x128xf32>
    %c0_7 = arith.constant 0 : index
    %c0_8 = arith.constant 0 : index
    %c0_9 = arith.constant 0 : index
    %17 = vector.load %arg6[%c0_7, %c0_8, %c0_9] : memref<1x8x128xf32, #tpu.memory_space<vmem>>, vector<1x8x128xf32>
    %18 = vector.shape_cast %17 : vector<1x8x128xf32> to vector<8x128xf32>
    %19 = vector.shape_cast %16 : vector<8x128xf32> to vector<1x8x128xf32>
    tpu.vector_store %arg6[%c0_7, %c0_8, %c0_9], %19 {strides = array<i32>} : memref<1x8x128xf32, #tpu.memory_space<vmem>>, vector<1x8x128xf32>,
    return
  }
  func.func @transform_0(%arg0: i32, %arg1: i32) -> (i32, i32, i32) {
    %c0_i32 = arith.constant 0 : i32
    %c0_i32_0 = arith.constant 0 : i32
    %c0_i32_1 = arith.constant 0 : i32
    return %arg0, %c0_i32, %c0_i32_0 : i32, i32, i32
  }
  func.func @transform_1(%arg0: i32, %arg1: i32) -> (i32, i32, i32) {
    %c0_i32 = arith.constant 0 : i32
    %c0_i32_0 = arith.constant 0 : i32
    %c0_i32_1 = arith.constant 0 : i32
    return %arg0, %c0_i32, %c0_i32_0 : i32, i32, i32
  }
  func.func @transform_2(%arg0: i32, %arg1: i32) -> (i32, i32, i32) {
    %c0_i32 = arith.constant 0 : i32
    %c0_i32_0 = arith.constant 0 : i32
    return %arg0, %c0_i32, %arg1 : i32, i32, i32
  }
  func.func @transform_3(%arg0: i32, %arg1: i32) -> (i32, i32, i32) {
    %c0_i32 = arith.constant 0 : i32
    %c0_i32_0 = arith.constant 0 : i32
    %c0_i32_1 = arith.constant 0 : i32
    return %arg0, %c0_i32, %c0_i32_0 : i32, i32, i32
  }
  func.func @transform_4(%arg0: i32, %arg1: i32) -> (i32, i32, i32) {
    %c0_i32 = arith.constant 0 : i32
    %c0_i32_0 = arith.constant 0 : i32
    return %arg0, %c0_i32, %arg1 : i32, i32, i32
  }
}

</mosaic_0001>

<bundles_post_ra>
// kernel: separate_bn_necks.1
= control target key start
LH: loop header
LB: loop body
LE: loop exit
PB: predicated region body
PF: predicated region fallthrough
CT: control target
= control target key end

     0   :  { %10 = vsyncpa [#allocation4], 0  ;;  %s971_s0 = inlined_call_operand.vmem [shape: f32[4,8,32], index: 0, kind: input, shape index: {}]   ;;  %s972_s1 = inlined_call_operand.vmem [shape: f32[4,2,32], index: 1, kind: input, shape index: {}]   ;;  %s973_s2 = inlined_call_operand.vmem [shape: bf16[4,32,128], index: 2, kind: input, shape index: {}]   ;;  %s974_s3 = inlined_call_operand.hbm [shape: f32[4,8,32], index: 3, kind: output, shape index: {0}]   ;;  %s975_s4 = inlined_call_operand.hbm [shape: f32[4,8,128], index: 4, kind: output, shape index: {1}]  }
   0x1   :  { %12 = vsyncpa [#allocation4 + $0x1], 0 }
   0x2   :  { %13 = vsyncpa [#allocation6], 0 }
   0x3   :  { %15 = vsyncpa [#allocation6 + $0x1], 0  ;;  %s808_s15 = smov 0   ;;  %s810_s16 = smov 0  }
   0x4   :  { %s812_s17 = smov 0   ;;  %s814_s18 = smov 0  }
   0x5   :  { %s816_s19 = smov 0   ;;  %s818_s20 = smov 0  }
   0x6 LB: > { %s560_s21 = sadd.s32 4294967295, %s777_s20   ;;  %s561_s22 = sadd.s32 4294967294, %s777_s20   ;;  %s777_s20 = sphi %s818_s20, %s21_s20   ;;  %s773_s19 = sphi %s816_s19, %s982_s19   ;;  %s769_s18 = sphi %s814_s18, %s981_s18   ;;  %s765_s17 = sphi %s812_s17, %s980_s17   ;;  %s761_s16 = sphi %s810_s16, %s979_s16   ;;  %s757_s15 = sphi %s808_s15, %s978_s15  }
   0x7   : > { %s33_s23 = sadd.s32 1, %s773_s19  ;;  %s120_s24 = sadd.s32 1, %s765_s17 }
   0x8   : > { %p35_p0 = scmp.ge.s32.totalorder %s33_s23, 4  ;;  %p130_p1 = scmp.ne.s32.totalorder %s765_s17, %s761_s16 }
   0x9   : > { %p131_p2 = scmp.eq.s32.totalorder %s560_s21, 3  ;;  %p136_p3 = scmp.ne.s32.totalorder %s761_s16, %s757_s15 }
   0xa   : > { %s984_s23 = smov (%p35_p0, %s33_s23), 0  ;;  %p137_p5 = scmp.eq.s32.totalorder %s561_s22, 3 }
   0xb   : > { %p848_p4 = por %p131_p2, %p130_p1  ;;  %s117_s26 = ssub.s32 %s773_s19, %s984_s23 }
   0xc   : > { %p564_p6 = scmp.ge.s32.totalorder %s777_s20, 1  ;;  %p118_p7 = scmp.eq.s32.totalorder %s117_s26, 0 }
   0xd   : > { %p855_p8 = por %p137_p5, %p136_p3  ;;  %p208_p9 = scmp.lt.s32.totalorder %s777_s20, 5 }
   0xe   : > { %s861_s28 = scalar_select %p118_p7, %s765_s17, %s120_s24  }
   0xf   : > { %p209_p10 = pnand %p564_p6, %p208_p9 }
  0x10   : > { %p250_p11 = scmp.lt.s32.totalorder (!%p209_p10), %s769_s18, 3  ;;  %vm273_vm0 = vcmask (!%p209_p10), 261120   ;;  %v301_v20 = vlaneseq (!%p209_p10)  ;;  %v779_v60 = vmov (!%p209_p10), 0.0   ;;  %vm780_vm1 = vmmov (!%p209_p10), 0   ;;  %s883_s22 = sand.u32 (!%p209_p10), 1, %s761_s16  }
  0x11   : > { %212 = sbr.rel (%p209_p10) target bundleno = 485 (0x1e5), region = 32  ;;  %591 = vmatprep.subr.bf16.mxu0 (!%p209_p10), %v779_v60  ;;  %595 = vmatprep.mubr.msk.bf16.mxu0 (!%p209_p10), %vm780_vm1, %v779_v60  ;;  %s565_s24 = sshll.u32 (!%p209_p10), %s883_s22, 3  ;;  %vm320_vm2 = vcmask (!%p209_p10), 257024  }
  0x12   : > { %v302_v21 = vshrl.u32 (!%p209_p10), %v301_v20, 7  ;;  %s242_s26 = scalar_lea.vmem (!%p209_p10), [#allocation3], %s565_s24  ;;  %s781_s10 = smov (!%p209_p10), [#allocation3]  }
  0x14   : > { %v303_v23 = vsub.s32 (!%p209_p10), 0, %v302_v21  ;;  %v308_v29 = vsub.s32 (!%p209_p10), 1, %v302_v21 }
  0x18   : > { %s865_s29 = scalar_select %p250_p11, %s769_s18, 3 }
  0x1a   : > { %s567_s30 = sshll.u32 %s865_s29, 3  ;;  %s568_s8 = sshll.u32 %s865_s29, 1 }
  0x1b   : > { %s253_s7 = scalar_lea.vmem %s971_s0, %s567_s30  ;;  %s257_s11 = scalar_lea.vmem %s972_s1, %s568_s8 }
  0x1c   : > { %v271_v0 = vld [vmem:[%s253_s7] sm:$0xff]  ;;  %s578_s12 = sshll.u32 %s865_s29, 4  ;;  %s574_s29 = sshll.u32 %s769_s18, 7 }
  0x1d   : > { %v274_v1 = vsel %vm273_vm0, %v271_v0, 0.0  ;;  %v272_v22 = vld [vmem:[%s257_s11] sm:$0x3]  ;;  %s265_s21 = scalar_lea.vmem %s973_s2, %s578_s12  ;;  %s896_s6 = scalar_lea.hbm %s974_s3, %s574_s29 }
  0x1e   : > { %v275_v2 = vrot.slane %v274_v1, 4  ;;  %v580_v32 = vld [vmem:[%s265_s21] sm:$0xff]   ;;  %v587_v36 = vld [vmem:[%s265_s21 + $0x8] sm:$0xff]   ;;  %s416_s7 = sshll.u32 %s242_s26, 4  ;;  %s398_s8 = scalar_lea.sflag [#allocation4], %s883_s22  ;;  %s417_s7 = int_to_ptr.vmem [resolvable:$true] %s416_s7 }
  0x1f   : > { %v581_v34 = vunpack.c.l.bf16 %v580_v32  ;;  %v582_v35 = vunpack.c.h.bf16 %v580_v32  ;;  %v585_v38 = vunpack.c.l.bf16 %v587_v36  ;;  %v586_v42 = vunpack.c.h.bf16 %v587_v36  ;;  %s667_s9 = scalar_lea.vmem %s417_s7, 128  ;;  %s671_s11 = sshll.u32 %s781_s10, 4  ;;  %s672_s11 = int_to_ptr.vmem [resolvable:$false] %s671_s11 }
  0x20   : > { %v276_v3 = vadd.f32 %v275_v2, %v274_v1  ;;  %p668_p12 = scmp.ne.s32.totalorder %s417_s7, %s667_s9  ;;  %s673_s12 = scalar_lea.vmem %s672_s11, 256 }
  0x21   : > { %v330_v39 = vmul.f32 %v581_v34, %v581_v34  ;;  %v331_v40 = vmul.f32 %v582_v35, %v582_v35  ;;  %v332_v43 = vmul.f32 %v585_v38, %v585_v38  ;;  %v333_v46 = vmul.f32 %v586_v42, %v586_v42  ;;  %p674_p1 = scmp.lt.s32.totalorder %s417_s7, %s672_s11  ;;  %p675_p2 = scmp.lt.s32.totalorder %s673_s12, %s667_s9 }
  0x22   : > { %v277_v4 = vrot.slane %v276_v3, 2  ;;  %p669_p13 = pnand %p668_p12, %p848_p4 }
  0x23   : > { %v334_v44 = vadd.f32 %v331_v40, %v330_v39  ;;  %p676_p3 = por %p675_p2, %p674_p1 }
  0x24   : > { %v278_v5 = vadd.f32 %v277_v4, %v276_v3  ;;  %p670_p0 = pneg %p669_p13 }
  0x25   : > { %v335_v47 = vadd.f32 %v334_v44, %v332_v43 }
  0x26   : > { %v279_v6 = vrot.slane %v278_v5, 1  ;;  %p677_p5 = pnand %p676_p3, %p670_p0 }
  0x27   : > { %v336_v48 = vadd.f32 %v335_v47, %v333_v46 }
  0x28   : > { %v280_v7 = vadd.f32 %v279_v6, %v278_v5 }
  0x29   : > { %v337_v49 = vrot.slane %v336_v48, 4 }
  0x2a   : > { %v282_v8 = vmul.f32 0.125, %v280_v7 }
  0x2b   : > { %v338_v50 = vadd.f32 %v337_v49, %v336_v48 }
  0x2c   : > { %v283_v9 = vsub.f32 %v271_v0, %v282_v8 }
  0x2d   : > { %v339_v51 = vrot.slane %v338_v50, 2 }
  0x2e   : > { %v284_v10 = vmul.f32 %v283_v9, %v283_v9 }
  0x2f   : > { %v340_v52 = vadd.f32 %v339_v51, %v338_v50 }
  0x30   : > { %v285_v11 = vsel %vm273_vm0, %v284_v10, 0.0 }
  0x31   : > { %v286_v12 = vrot.slane %v285_v11, 4  ;;  %v341_v53 = vrot.slane %v340_v52, 1 }
  0x33   : > { %v287_v13 = vadd.f32 %v286_v12, %v285_v11  ;;  %v342_v54 = vadd.f32 %v341_v53, %v340_v52 }
  0x35   : > { %v288_v14 = vrot.slane %v287_v13, 2  ;;  %v343_v55 = vmax.f32 %v342_v54, 1e-24 }
  0x37   : > { %v289_v15 = vadd.f32 %v288_v14, %v287_v13 }
  0x39   : > { %v290_v16 = vrot.slane %v289_v15, 1 }
  0x3b   : > { %v291_v17 = vadd.f32 %v290_v16, %v289_v15 }
  0x3d   : > { %v292_v18 = vmul.f32 0.125, %v291_v17 }
  0x3f   : > { %v293_v19 = vadd.f32 1e-05, %v292_v18 }
  0x41   : > { %661 = vrsqrt.f32 %v293_v19 }
  0x42   : > { %663 = vrsqrt.f32 %v343_v55 }
  0x4b   : > { %v662_v24 = vpop.eup %661 }
  0x4c   : > { %v295_v25 = vmul.f32 %v662_v24, %v272_v22  ;;  %v664_v56 = vpop.eup %663 }
  0x4d   : > { %v345_v57 = vmul.f32 %v664_v56, %v581_v34  ;;  %v346_v58 = vmul.f32 %v664_v56, %v582_v35  ;;  %v347_v61 = vmul.f32 %v664_v56, %v585_v38  ;;  %v348_v62 = vmul.f32 %v664_v56, %v586_v42 }
  0x4e   : > { %v296_v26 = vmul.f32 %v295_v25, %v282_v8  ;;  %v304_v27 = vrot.slane %v295_v25, %v303_v23 }
  0x4f   : > { %v349_v59 = vpack.c.bf16 %v346_v58, %v345_v57  ;;  %v350_v63 = vpack.c.bf16 %v348_v62, %v347_v61 }
  0x50   : > { %v298_v28 = vrot.slane %v296_v26, 7  ;;  %v305_v31 = vmul.f32 %v304_v27, %v271_v0 }
  0x51   : > { %592 = vmatpush3.bf16.msra.mxu0 %v349_v59 }
  0x52   : > { %v300_v30 = vsub.f32 %v272_v22, %v298_v28  ;;  %593 = vmatprep.subr.bf16.mxu0 %v779_v60 }
  0x54   : > { %v309_v33 = vrot.slane %v300_v30, %v308_v29 }
  0x55   : > { %594 = vmatpush3.bf16.msra.mxu0 %v350_v63 }
  0x56   : > { %v310_v37 = vadd.f32 %v309_v33, %v305_v31 }
  0x58   : > { %v311_v41 = vmul.f32 %v310_v37, %v310_v37 }
  0x5a   : > { %v312_v45 = vsel %vm273_vm0, %v311_v41, 0.0 }
  0x5b   : > { %313 = vadd.xlane.f32.xlu0 %v312_v45 }
  0xe8   : > { %v314_v0 = vpop.xlane.xlu0 %313 }
  0xe9   : > { %v315_v1 = vmax.f32 %v314_v0, 1e-24 }
  0xeb   : > { %665 = vrsqrt.f32 %v315_v1 }
  0xf5   : > { %v666_v2 = vpop.eup %665 }
  0xf6   : > { %v317_v3 = vmul.f32 %v666_v2, %v310_v37 }
  0xf8   : > { %v319_v4 = vpack.c.bf16 %v317_v3, %v317_v3  ;;  %318 = vst.msk [vmem:[%s242_s26] sm:$0xff] %vm273_vm0, %v317_v3 }
  0xfa   : > { %321 = vst.msk [vmem:[#allocation2] sm:$0xf] %vm320_vm2, %v319_v4 }
 0x101   : > { %v351_v5 = vld [vmem:[#allocation2] sm:$0xf] }
 0x102   : > { %596 = vmatmul.mubr.msk.bf16.vlgmr.msra.gmra.mrb[0].mxu0 %vm273_vm0, %v351_v5 }
 0x103   : > { %680 = shalt.err (!%p677_p5)
}
 0x104   : > { %s681_s13 = scalar_lea.hbm %s896_s6, 128  ;;  %s685_s26 = scalar_lea.hbm %s974_s3, 512 }
 0x105   : > { %p682_p6 = scmp.ne.s32.totalorder %s896_s6, %s681_s13  ;;  %p686_p10 = scmp.lt.u32.totalorder %s896_s6, %s974_s3 }
 0x106   : > { %p687_p11 = scmp.lt.u32.totalorder %s685_s26, %s681_s13  ;;  %p689_p13 = scmp.lt.u32.totalorder %s681_s13, %s896_s6 }
 0x107   : > { %p683_p7 = pnand %p682_p6, %p848_p4 }
 0x108   : > { %p688_p12 = por %p687_p11, %p686_p10 }
 0x109   : > { %p684_p9 = pneg %p683_p7 }
 0x10a   : > { %p690_p0 = por %p689_p13, %p688_p12 }
 0x10c   : > { %p691_p1 = pnand %p690_p0, %p684_p9 }
 0x10e   : > { %694 = shalt.err (!%p691_p1)
}
 0x10f   : > { %599 = dma.vmem_to_hbm [thread:$0]  (%p848_p4), %s417_s7, 128, %s896_s6, %s398_s8  }
 0x110   : > { %s249_s9 = scalar_lea.vmem [#allocation5], %s565_s24  ;;  %s925_s13 = scalar_lea.hbm %s975_s4, %s574_s29 }
 0x111   : > { %s430_s10 = sshll.u32 %s249_s9, 4  ;;  %s403_s14 = scalar_lea.sflag [#allocation6], %s883_s22  ;;  %s918_s10 = int_to_ptr.vmem [resolvable:$true] %s430_s10 }
 0x112   : > { %s695_s6 = scalar_lea.vmem %s918_s10, 128  ;;  %s782_s24 = smov [#allocation5]  }
 0x113   : > { %p696_p2 = scmp.ne.s32.totalorder %s918_s10, %s695_s6  ;;  %s699_s18 = sshll.u32 %s782_s24, 4  ;;  %s700_s18 = int_to_ptr.vmem [resolvable:$false] %s699_s18 }
 0x114   : > { %s701_s7 = scalar_lea.vmem %s700_s18, 256  ;;  %p702_p6 = scmp.lt.s32.totalorder %s918_s10, %s700_s18 }
 0x115   : > { %p697_p3 = pnand %p696_p2, %p848_p4  ;;  %p703_p7 = scmp.lt.s32.totalorder %s701_s7, %s695_s6 }
 0x117   : > { %p698_p5 = pneg %p697_p3  ;;  %p704_p9 = por %p703_p7, %p702_p6 }
 0x119   : > { %p705_p10 = pnand %p704_p9, %p698_p5 }
 0x1d5   : > { %v390_v6 = vpop.f32.mrb[0].mxu0 }
 0x1d6   : > { %396 = vst [vmem:[%s249_s9] sm:$0xff] %v390_v6  ;;  %v597_v7 = vpop.f32.mrb[1].mxu0 }
 0x1d7   : > { %v393_v8 = vpop.f32.mrb[2].mxu0 }
 0x1d8   : > { %708 = shalt.err (!%p705_p10)
}
 0x1d9   : > { %s709_s22 = scalar_lea.hbm %s925_s13, 128  ;;  %s713_s21 = scalar_lea.hbm %s975_s4, 512 }
 0x1da   : > { %p710_p11 = scmp.ne.s32.totalorder %s925_s13, %s709_s22  ;;  %p714_p0 = scmp.lt.u32.totalorder %s925_s13, %s975_s4 }
 0x1db   : > { %p715_p1 = scmp.lt.u32.totalorder %s713_s21, %s709_s22  ;;  %p717_p3 = scmp.lt.u32.totalorder %s709_s22, %s925_s13 }
 0x1dc   : > { %p711_p12 = pnand %p710_p11, %p848_p4 }
 0x1dd   : > { %p716_p2 = por %p715_p1, %p714_p0 }
 0x1de   : > { %p712_p13 = pneg %p711_p12 }
 0x1df   : > { %p718_p5 = por %p717_p3, %p716_p2 }
 0x1e1   : > { %p719_p6 = pnand %p718_p5, %p712_p13 }
 0x1e3   : > { %722 = shalt.err (!%p719_p6)
}
 0x1e4   : > { %600 = dma.vmem_to_hbm [thread:$0]  (%p848_p4), %s918_s10, 128, %s925_s13, %s403_s14   ;;  %v598_v9 = vpop.f32.mrb[3].mxu0 }
 0x1e5 PF: > { %p610_p7 = scmp.ge.s32.totalorder %s777_s20, 2  ;;  %s442_s5 = sand.u32 1, %s757_s15  }
 0x1e6   : > { %s443_s9 = scalar_lea.sflag [#allocation4], %s442_s5 }
 0x1e7   : > { %p604_p9 = pnand %p610_p7, %p855_p8 }
 0x1e9   : > { %748 = dma.done.wait (!%p604_p9), %s443_s9, 128  }
 0x1ea   : > { %750 = vsyncadd (!%p604_p9), %s443_s9, 4294967168  ;;  %s452_s11 = scalar_lea.sflag [#allocation6], %s442_s5 }
 0x1eb   : > { %752 = dma.done.wait (!%p604_p9), %s452_s11, 128  }
 0x1ec   : > { %754 = vsyncadd (!%p604_p9), %s452_s11, 4294967168  ;;  %s21_s20 = sadd.s32 1, %s777_s20   ;;  %s978_s15 = smov %s761_s16 }
 0x1ed   : > { %p18_p10 = scmp.ge.s32.totalorder %s21_s20, 6   ;;  %s979_s16 = smov %s765_s17 }
 0x1ee   : > { %s980_s17 = smov %s861_s28  ;;  %s981_s18 = smov %s773_s19 }
 0x1ef   : > { %s982_s19 = smov %s984_s23  ;;  %20 = sbr.rel (!%p18_p10) target bundleno = 6 (0x6), region = 94 }
 0x1f6   :  { %457 = vsyncpa [#allocation4], 1 }
 0x1f7   :  { %459 = vsyncpa [#allocation4 + $0x1], 1 }
 0x1f8   :  { %460 = vsyncpa [#allocation6], 1 }
 0x1f9   :  { %462 = vsyncpa [#allocation6 + $0x1], 1 }

</bundles_post_ra>
